<compile_context>
chip_gen: v6e
topology: v6e:2x2x1
jax: 0.10.0
libtpu: 0.0.40
codegen_flags: <defaults>
</compile_context>

<pallas_src>
import jax
import jax.numpy as jnp
from jax.experimental import pallas as pl
from jax.experimental.pallas import tpu as pltpu


def fc_predictor_kernel(x_ref,
                        w1_ref, b1_ref,
                        w23_ref, b23_ref,
                        w4_ref, b4_ref,
                        w5_ref, b5_ref,
                        out_ref):
    # x: (tile_n, H) -- batch rows as stored in HBM (no wrapper transpose pass).
    x = x_ref[...]
    if x.dtype != jnp.float32:
        x = x.astype(jnp.float32)
    # In-kernel transpose to lane-dense column layout (H, tile_n): batch on lanes.
    xt = x.T

    # Linear(H,20) + ReLU
    h = jnp.dot(w1_ref[...], xt, preferred_element_type=jnp.float32) + b1_ref[...]
    h = jnp.maximum(h, 0.0)
    # Folded Linear(20,10) @ Linear(10,20) (no ReLU between them originally) + ReLU
    h = jnp.dot(w23_ref[...], h, preferred_element_type=jnp.float32) + b23_ref[...]
    h = jnp.maximum(h, 0.0)
    # Linear(20,8) + ReLU
    h = jnp.dot(w4_ref[...], h, preferred_element_type=jnp.float32) + b4_ref[...]
    h = jnp.maximum(h, 0.0)
    # Linear(8,5)
    out = jnp.dot(w5_ref[...], h, preferred_element_type=jnp.float32) + b5_ref[...]

    out_ref[...] = out.astype(out_ref.dtype)


def _round_up(x, m):
    return (x + m - 1) // m * m


def _device_defaults():
    """Per-chip tile cap / scoped-VMEM limit / megacore flag (perf-only)."""
    kind = ""
    try:
        kind = jax.devices()[0].device_kind.lower()
    except Exception:
        pass
    if ("v5e" in kind) or ("v5 lite" in kind) or ("v5lite" in kind):
        # 0.82 TB/s HBM: 8K-lane steps already amortize the step overhead.
        return {"tile_cap": 8192, "vmem_limit": 64 << 20, "megacore": False}
    if "v7" in kind:
        # 64 MiB physical VMEM; 2 TensorCores -> keep >=2 balanced grid steps.
        return {"tile_cap": 32768, "vmem_limit": 48 << 20, "megacore": True}
    # v6e / other single-TC chips with 128 MiB VMEM.
    return {"tile_cap": 32768, "vmem_limit": 64 << 20, "megacore": False}


def pack_params(params, dtype=jnp.float32):
    """One-time weight packing (hoist out of the hot path).

    params: 5 pairs (W (in,out), b (1,out)) in call order (torch weights pre-transposed).
    Returns 8 arrays: weights as (out, in), biases as (out, 1); the ReLU-free
    Linear(20->10) @ Linear(10->20) pair is folded into one 20->20 layer.
    """
    (w1, b1), (w2, b2), (w3, b3), (w4, b4), (w5, b5) = params
    w23 = jnp.asarray(w2, jnp.float32) @ jnp.asarray(w3, jnp.float32)   # (20, 20), (in,out)
    b23 = jnp.asarray(b2, jnp.float32) @ jnp.asarray(w3, jnp.float32) + jnp.asarray(b3, jnp.float32)
    flat = []
    for w, b in ((w1, b1), (w23, b23), (w4, b4), (w5, b5)):
        flat.append(jnp.asarray(w, dtype).T)               # (out, in)
        flat.append(jnp.asarray(b, dtype).reshape(-1, 1))  # (out, 1)
    return tuple(flat)


def fc_predictor_packed(c, packed, *, tile_n=None, input_dtype=None):
    """c: (N, hidden_channels).  packed: output of pack_params.  Returns (N, node_year) f32."""
    N, H = c.shape
    node_year = packed[-1].shape[0]
    cfg = _device_defaults()

    in_dtype = jnp.dtype(input_dtype) if input_dtype is not None else jnp.dtype(jnp.float32)
    cin = jnp.asarray(c, in_dtype)   # no transpose, no pad: streamed as-is

    # --- batch tile selection (lane axis of the intermediates/output) ---
    # rough per-lane-column VMEM footprint: double-buffered input rows, the f32
    # transposed copy, the (<=24-sublane) f32 intermediates, double-buffered output.
    bytes_per_col = 2 * H * in_dtype.itemsize + 4 * (H + 3 * 24 + 2 * 8)
    budget_cols = int(cfg["vmem_limit"] * 0.6) // bytes_per_col
    vmem_cap = max(128, (budget_cols // 128) * 128)

    if tile_n is None:
        tile_n = cfg["tile_cap"]
    tile_n = max(128, _round_up(int(tile_n), 128))
    tile_n = min(tile_n, vmem_cap)

    if N <= tile_n:
        if cfg["megacore"] and N >= 256:
            # v7x only: split into 2 roughly balanced steps so both TCs get work.
            half = _round_up(pl.cdiv(N, 2), 128)
            tile_n = half if half < N else N
        else:
            tile_n = N          # single exact block; no padding semantics needed
    grid = pl.cdiv(N, tile_n)   # partial last block handled by Pallas edge masking

    def const_spec(arr):
        # Small weight/bias fully resident; constant block index -> no re-DMA per step.
        return pl.BlockSpec(arr.shape, lambda i: (0, 0))

    in_specs = [pl.BlockSpec((tile_n, H), lambda i: (i, 0))]
    in_specs += [const_spec(a) for a in packed]
    # Lane-dense output: (node_year, N), batch on the 128-wide lane axis.
    out_specs = pl.BlockSpec((node_year, tile_n), lambda i: (0, i))

    out_t = pl.pallas_call(
        fc_predictor_kernel,
        out_shape=jax.ShapeDtypeStruct((node_year, N), jnp.float32),
        grid_spec=pltpu.PrefetchScalarGridSpec(
            num_scalar_prefetch=0,
            grid=(grid,),
            in_specs=in_specs,
            out_specs=out_specs,
        ),
        compiler_params=pltpu.CompilerParams(
            dimension_semantics=("parallel",),
            vmem_limit_bytes=cfg["vmem_limit"]),
    )(cin, *packed)

    # Back to the PyTorch-facing layout (N, node_year); output pass is tiny (5 f32 / row).
    return out_t.T


def fc_predictor(c, params, *, tile_n=None, input_dtype=None):
    """Convenience wrapper: packs params on the fly (prefer pack_params + fc_predictor_packed)."""
    return fc_predictor_packed(c, pack_params(params), tile_n=tile_n, input_dtype=input_dtype)


def init_params(key, hidden_channels, hidden_dims=(20, 10, 20, 8), node_year=5):
    """Deterministic synthetic params.  Weights stored as (in, out); biases as (1, out)."""
    dims = [hidden_channels, hidden_dims[0], hidden_dims[1],
            hidden_dims[2], hidden_dims[3], node_year]
    params = []
    for i in range(len(dims) - 1):
        key, kw, kb = jax.random.split(key, 3)
        fan_in, fan_out = dims[i], dims[i + 1]
        scale = 1.0 / jnp.sqrt(jnp.float32(fan_in))
        w = jax.random.uniform(kw, (fan_in, fan_out), jnp.float32, -scale, scale)
        b = jax.random.uniform(kb, (1, fan_out), jnp.float32, -scale, scale)
        params.append((w, b))
    return params


def fc_predictor_ref(c, params):
    """Pure-JAX reference of the PyTorch forward (un-folded)."""
    x = c
    # linear1
    x = jnp.maximum(x @ params[0][0] + params[0][1], 0.0)
    x = x @ params[1][0] + params[1][1]
    # linear2
    x = jnp.maximum(x @ params[2][0] + params[2][1], 0.0)
    x = jnp.maximum(x @ params[3][0] + params[3][1], 0.0)
    x = x @ params[4][0] + params[4][1]
    return x


if __name__ == "__main__":
    key = jax.random.PRNGKey(0)
    hidden_channels = 32

    key, kc = jax.random.split(key)
    params = init_params(key, hidden_channels)
    packed = pack_params(params)

    # Small single-block batch.
    c = jax.random.normal(kc, (16, hidden_channels), jnp.float32)
    pred = jax.block_until_ready(fc_predictor_packed(c, packed))
    ref = fc_predictor_ref(c, params)
    assert pred.shape == (16, 5)
    assert jnp.allclose(pred, ref, atol=1e-4, rtol=1e-4), "mismatch vs reference (small batch)"

    # Ragged multi-tile batch with a forced small tile: 3 grid steps, partial last block,
    # exercises the no-pad edge-masking path.
    key, kc2 = jax.random.split(key)
    c2 = jax.random.normal(kc2, (300, hidden_channels), jnp.float32)
    pred2 = jax.block_until_ready(fc_predictor_packed(c2, packed, tile_n=128))
    ref2 = fc_predictor_ref(c2, params)
    assert pred2.shape == (300, 5)
    assert jnp.allclose(pred2, ref2, atol=1e-4, rtol=1e-4), "mismatch vs reference (ragged batch)"

    # Same batch with device-default tiling (exercises the v7x two-step split on v7x,
    # single big block elsewhere).
    pred3 = jax.block_until_ready(fc_predictor_packed(c2, packed))
    assert jnp.allclose(pred3, ref2, atol=1e-4, rtol=1e-4), "mismatch vs reference (default tile)"

    # Optional bf16 input stream (halves HBM input bytes; f32 weights + accumulation).
    pred4 = jax.block_until_ready(fc_predictor_packed(c2, packed, input_dtype=jnp.bfloat16))
    assert jnp.allclose(pred4, ref2, atol=1e-1, rtol=1e-1), "mismatch vs reference (bf16 input)"

    print("KERNEL_OK")
</pallas_src>

<mosaic_0001>
module attributes {stable_mosaic.version = 11 : i64} {
  func.func @fc_predictor_kernel(%arg0: i32, %arg1: memref<16x32xf32, #tpu.memory_space<vmem>>, %arg2: memref<20x32xf32, #tpu.memory_space<vmem>>, %arg3: memref<20x1xf32, #tpu.memory_space<vmem>>, %arg4: memref<20x20xf32, #tpu.memory_space<vmem>>, %arg5: memref<20x1xf32, #tpu.memory_space<vmem>>, %arg6: memref<8x20xf32, #tpu.memory_space<vmem>>, %arg7: memref<8x1xf32, #tpu.memory_space<vmem>>, %arg8: memref<5x8xf32, #tpu.memory_space<vmem>>, %arg9: memref<5x1xf32, #tpu.memory_space<vmem>>, %arg10: memref<5x16xf32, #tpu.memory_space<vmem>>) attributes {dimension_semantics = [#tpu.dimension_semantics<parallel>], iteration_bounds = array<i64: 1>, scalar_prefetch = 0 : i64, scratch_operands = 0 : i64, tpu.core_type = #tpu.core_type<tc>, window_params = [{transform_indices = @transform_0, window_bounds = array<i64: 16, 32>}, {pipeline_mode = #tpu.pipeline_mode<synchronous>, transform_indices = @transform_1, window_bounds = array<i64: 20, 32>}, {pipeline_mode = #tpu.pipeline_mode<synchronous>, transform_indices = @transform_2, window_bounds = array<i64: 20, 1>}, {pipeline_mode = #tpu.pipeline_mode<synchronous>, transform_indices = @transform_3, window_bounds = array<i64: 20, 20>}, {pipeline_mode = #tpu.pipeline_mode<synchronous>, transform_indices = @transform_4, window_bounds = array<i64: 20, 1>}, {pipeline_mode = #tpu.pipeline_mode<synchronous>, transform_indices = @transform_5, window_bounds = array<i64: 8, 20>}, {pipeline_mode = #tpu.pipeline_mode<synchronous>, transform_indices = @transform_6, window_bounds = array<i64: 8, 1>}, {pipeline_mode = #tpu.pipeline_mode<synchronous>, transform_indices = @transform_7, window_bounds = array<i64: 5, 8>}, {pipeline_mode = #tpu.pipeline_mode<synchronous>, transform_indices = @transform_8, window_bounds = array<i64: 5, 1>}, {transform_indices = @transform_9, window_bounds = array<i64: 5, 16>}]} {
    %c0 = arith.constant 0 : index
    %c0_0 = arith.constant 0 : index
    %0 = vector.load %arg1[%c0, %c0_0] : memref<16x32xf32, #tpu.memory_space<vmem>>, vector<16x32xf32>
    %1 = tpu.transpose %0, [1, 0] : vector<16x32xf32> -> vector<32x16xf32>
    %c0_1 = arith.constant 0 : index
    %c0_2 = arith.constant 0 : index
    %2 = vector.load %arg2[%c0_1, %c0_2] : memref<20x32xf32, #tpu.memory_space<vmem>>, vector<20x32xf32>
    %cst = arith.constant dense<0.000000e+00> : vector<20x16xf32>
    %3 = tpu.matmul %2, %1, %cst {dimension_numbers = #tpu.dot_dimension_numbers<[1], [0], [0], [1], [0, 0, 1, 1], [], []>} : vector<20x32xf32>, vector<32x16xf32>, vector<20x16xf32> -> vector<20x16xf32>
    %c0_3 = arith.constant 0 : index
    %c0_4 = arith.constant 0 : index
    %4 = vector.load %arg3[%c0_3, %c0_4] : memref<20x1xf32, #tpu.memory_space<vmem>>, vector<20x1xf32>
    %5 = vector.broadcast %4 : vector<20x1xf32> to vector<20x16xf32>
    %6 = arith.addf %3, %5 : vector<20x16xf32>
    %cst_5 = arith.constant 0.000000e+00 : f32
    %7 = vector.broadcast %cst_5 : f32 to vector<20x16xf32>
    %8 = arith.maximumf %6, %7 : vector<20x16xf32>
    %c0_6 = arith.constant 0 : index
    %c0_7 = arith.constant 0 : index
    %9 = vector.load %arg4[%c0_6, %c0_7] : memref<20x20xf32, #tpu.memory_space<vmem>>, vector<20x20xf32>
    %cst_8 = arith.constant dense<0.000000e+00> : vector<20x16xf32>
    %10 = tpu.matmul %9, %8, %cst_8 {dimension_numbers = #tpu.dot_dimension_numbers<[1], [0], [0], [1], [0, 0, 1, 1], [], []>} : vector<20x20xf32>, vector<20x16xf32>, vector<20x16xf32> -> vector<20x16xf32>
    %c0_9 = arith.constant 0 : index
    %c0_10 = arith.constant 0 : index
    %11 = vector.load %arg5[%c0_9, %c0_10] : memref<20x1xf32, #tpu.memory_space<vmem>>, vector<20x1xf32>
    %12 = vector.broadcast %11 : vector<20x1xf32> to vector<20x16xf32>
    %13 = arith.addf %10, %12 : vector<20x16xf32>
    %cst_11 = arith.constant 0.000000e+00 : f32
    %14 = vector.broadcast %cst_11 : f32 to vector<20x16xf32>
    %15 = arith.maximumf %13, %14 : vector<20x16xf32>
    %c0_12 = arith.constant 0 : index
    %c0_13 = arith.constant 0 : index
    %16 = vector.load %arg6[%c0_12, %c0_13] : memref<8x20xf32, #tpu.memory_space<vmem>>, vector<8x20xf32>
    %cst_14 = arith.constant dense<0.000000e+00> : vector<8x16xf32>
    %17 = tpu.matmul %16, %15, %cst_14 {dimension_numbers = #tpu.dot_dimension_numbers<[1], [0], [0], [1], [0, 0, 1, 1], [], []>} : vector<8x20xf32>, vector<20x16xf32>, vector<8x16xf32> -> vector<8x16xf32>
    %c0_15 = arith.constant 0 : index
    %c0_16 = arith.constant 0 : index
    %18 = vector.load %arg7[%c0_15, %c0_16] : memref<8x1xf32, #tpu.memory_space<vmem>>, vector<8x1xf32>
    %19 = vector.broadcast %18 : vector<8x1xf32> to vector<8x16xf32>
    %20 = arith.addf %17, %19 : vector<8x16xf32>
    %cst_17 = arith.constant 0.000000e+00 : f32
    %21 = vector.broadcast %cst_17 : f32 to vector<8x16xf32>
    %22 = arith.maximumf %20, %21 : vector<8x16xf32>
    %c0_18 = arith.constant 0 : index
    %c0_19 = arith.constant 0 : index
    %23 = vector.load %arg8[%c0_18, %c0_19] : memref<5x8xf32, #tpu.memory_space<vmem>>, vector<5x8xf32>
    %cst_20 = arith.constant dense<0.000000e+00> : vector<5x16xf32>
    %24 = tpu.matmul %23, %22, %cst_20 {dimension_numbers = #tpu.dot_dimension_numbers<[1], [0], [0], [1], [0, 0, 1, 1], [], []>} : vector<5x8xf32>, vector<8x16xf32>, vector<5x16xf32> -> vector<5x16xf32>
    %c0_21 = arith.constant 0 : index
    %c0_22 = arith.constant 0 : index
    %25 = vector.load %arg9[%c0_21, %c0_22] : memref<5x1xf32, #tpu.memory_space<vmem>>, vector<5x1xf32>
    %26 = vector.broadcast %25 : vector<5x1xf32> to vector<5x16xf32>
    %27 = arith.addf %24, %26 : vector<5x16xf32>
    %c0_23 = arith.constant 0 : index
    %c0_24 = arith.constant 0 : index
    %28 = vector.load %arg10[%c0_23, %c0_24] : memref<5x16xf32, #tpu.memory_space<vmem>>, vector<5x16xf32>
    tpu.vector_store %arg10[%c0_23, %c0_24], %27 {strides = array<i32>} : memref<5x16xf32, #tpu.memory_space<vmem>>, vector<5x16xf32>,
    return
  }
  func.func @transform_0(%arg0: i32) -> (i32, i32) {
    %c0_i32 = arith.constant 0 : i32
    %c0_i32_0 = arith.constant 0 : i32
    return %arg0, %c0_i32 : i32, i32
  }
  func.func @transform_1(%arg0: i32) -> (i32, i32) {
    %c0_i32 = arith.constant 0 : i32
    %c0_i32_0 = arith.constant 0 : i32
    %c0_i32_1 = arith.constant 0 : i32
    return %c0_i32, %c0_i32_0 : i32, i32
  }
  func.func @transform_2(%arg0: i32) -> (i32, i32) {
    %c0_i32 = arith.constant 0 : i32
    %c0_i32_0 = arith.constant 0 : i32
    %c0_i32_1 = arith.constant 0 : i32
    return %c0_i32, %c0_i32_0 : i32, i32
  }
  func.func @transform_3(%arg0: i32) -> (i32, i32) {
    %c0_i32 = arith.constant 0 : i32
    %c0_i32_0 = arith.constant 0 : i32
    %c0_i32_1 = arith.constant 0 : i32
    return %c0_i32, %c0_i32_0 : i32, i32
  }
  func.func @transform_4(%arg0: i32) -> (i32, i32) {
    %c0_i32 = arith.constant 0 : i32
    %c0_i32_0 = arith.constant 0 : i32
    %c0_i32_1 = arith.constant 0 : i32
    return %c0_i32, %c0_i32_0 : i32, i32
  }
  func.func @transform_5(%arg0: i32) -> (i32, i32) {
    %c0_i32 = arith.constant 0 : i32
    %c0_i32_0 = arith.constant 0 : i32
    %c0_i32_1 = arith.constant 0 : i32
    return %c0_i32, %c0_i32_0 : i32, i32
  }
  func.func @transform_6(%arg0: i32) -> (i32, i32) {
    %c0_i32 = arith.constant 0 : i32
    %c0_i32_0 = arith.constant 0 : i32
    %c0_i32_1 = arith.constant 0 : i32
    return %c0_i32, %c0_i32_0 : i32, i32
  }
  func.func @transform_7(%arg0: i32) -> (i32, i32) {
    %c0_i32 = arith.constant 0 : i32
    %c0_i32_0 = arith.constant 0 : i32
    %c0_i32_1 = arith.constant 0 : i32
    return %c0_i32, %c0_i32_0 : i32, i32
  }
  func.func @transform_8(%arg0: i32) -> (i32, i32) {
    %c0_i32 = arith.constant 0 : i32
    %c0_i32_0 = arith.constant 0 : i32
    %c0_i32_1 = arith.constant 0 : i32
    return %c0_i32, %c0_i32_0 : i32, i32
  }
  func.func @transform_9(%arg0: i32) -> (i32, i32) {
    %c0_i32 = arith.constant 0 : i32
    %c0_i32_0 = arith.constant 0 : i32
    return %c0_i32, %arg0 : i32, i32
  }
}

</mosaic_0001>

<bundles_post_ra>
// kernel: tpu_custom_call.1
= control target key start
LH: loop header
LB: loop body
LE: loop exit
PB: predicated region body
PF: predicated region fallthrough
CT: control target
= control target key end

     0   :  { %vm56_vm0 = vcmask 261120   ;;  %v553_v1 = vmov 0.0   ;;  %vm554_vm1 = vmmov 0   ;;  %v555_v3 = vmov 0   ;;  %s700_s0 = inlined_call_operand.vmem [shape: f32[16,32], index: 0, kind: input, shape index: {}]   ;;  %s701_s1 = inlined_call_operand.vmem [shape: f32[20,32], index: 1, kind: input, shape index: {}]   ;;  %s702_s2 = inlined_call_operand.vmem [shape: f32[20,1], index: 2, kind: input, shape index: {}]   ;;  %s703_s3 = inlined_call_operand.vmem [shape: f32[20,20], index: 3, kind: input, shape index: {}]   ;;  %s704_s4 = inlined_call_operand.vmem [shape: f32[20,1], index: 4, kind: input, shape index: {}]   ;;  %s705_s5 = inlined_call_operand.vmem [shape: f32[8,20], index: 5, kind: input, shape index: {}]   ;;  %s706_s6 = inlined_call_operand.vmem [shape: f32[8,1], index: 6, kind: input, shape index: {}]   ;;  %s707_s7 = inlined_call_operand.vmem [shape: f32[5,8], index: 7, kind: input, shape index: {}]   ;;  %s708_s8 = inlined_call_operand.vmem [shape: f32[5,1], index: 8, kind: input, shape index: {}]   ;;  %s709_s9 = inlined_call_operand.hbm [shape: f32[5,16], index: 9, kind: output, shape index: {}]  }
   0x1   :  { %v34_v0 = vld [vmem:[%s700_s0 + $0x8] sm:$0xff]  ;;  %483 = vmatprep.subr.mxu0 %v553_v1  ;;  %487 = vmatprep.mubr.msk.f32.mxu0 %vm554_vm1, %v553_v1  ;;  %v40_v2 = vld [vmem:[%s702_s2 + $0x10] sm:$0xf]  ;;  %v38_v4 = vld [vmem:[%s702_s2] sm:$0xff] }
   0x2   :  { %484 = vmatpush3.xpose.msk.msra.mxu0 %vm56_vm0, %v34_v0  ;;  %529 = vset.pattern.permute.xlu0 %v555_v3  ;;  %v33_v5 = vld [vmem:[%s700_s0] sm:$0xff]  ;;  %v39_v6 = vld [vmem:[%s702_s2 + $0x8] sm:$0xff] }
   0x3   :  { %485 = vmatprep.subr.mxu0 %v553_v1  ;;  %53 = vperm.xlu0 %529, %v40_v2  }
   0x4   :  { %530 = vset.pattern.permute.xlu1 %v555_v3  ;;  %496 = vmatprep.subr.mxu1 %v553_v1 }
   0x5   :  { %14 = vsyncpa [#allocation3], 0  ;;  %43 = vperm.xlu1 %530, %v38_v4   ;;  %502 = vmatprep.mubr.msk.f32.mxu1 %vm554_vm1, %v553_v1  ;;  %v35_v7 = vld [vmem:[%s701_s1] sm:$0xff]  ;;  %v160_v8 = vld [vmem:[%s704_s4 + $0x10] sm:$0xf]  ;;  %vm186_vm2 = vcmask 1043456  }
   0x6   :  { %486 = vmatpush3.xpose.msk.msra.mxu0 %vm56_vm0, %v33_v5  ;;  %v159_v9 = vld [vmem:[%s704_s4 + $0x8] sm:$0xff]  ;;  %v158_v11 = vld [vmem:[%s704_s4] sm:$0xff]  ;;  %v37_v13 = vld [vmem:[%s701_s1 + $0x10] sm:$0xf]  ;;  %vm176_vm3 = vcmask 162816   ;;  %vm364_vm4 = vcmask 64512  }
   0x7   :  { %48 = vperm.xlu0 %529, %v39_v6   ;;  %520 = vmatprep.subr.mxu0 %v553_v1  ;;  %v36_v10 = vld [vmem:[%s701_s1 + $0x8] sm:$0xff]  ;;  %v274_v12 = vld [vmem:[%s706_s6] sm:$0xff]  ;;  %v157_v32 = vld [vmem:[%s703_s3 + $0x10] sm:$0xf]  ;;  %s556_s17 = smov [#allocation2]   ;;  %vm438_vm5 = vcmask 126976  }
   0x8   :  { %v358_v14 = vld [vmem:[%s708_s8] sm:$0x1f]  ;;  %v156_v31 = vld [vmem:[%s703_s3 + $0x8] sm:$0xff]  ;;  %s446_s18 = sshll.u32 %s556_s17, 4  ;;  %s447_s18 = int_to_ptr.vmem [resolvable:$true] %s446_s18 }
   0x9   :  { %488 = vmatmul.mubr.msk.f32.vlgmr.msra.gmra.mxu0 %vm56_vm0, %v35_v7  ;;  %173 = vperm.xlu1 %530, %v160_v8   ;;  %v155_v30 = vld [vmem:[%s703_s3] sm:$0xff]  ;;  %p536_p1 = scmp.lt.s32.totalorder %s447_s18, %s447_s18 }
   0xa   :  { %490 = vmatprep.mubr.msk.f32.mxu0 %vm554_vm1, %v553_v1  ;;  %v273_v48 = vld [vmem:[%s705_s5] sm:$0xff]  ;;  %s531_s5 = scalar_lea.vmem %s447_s18, 128 }
   0xb   :  { %168 = vperm.xlu0 %529, %v159_v9   ;;  %v357_v54 = vld [vmem:[%s707_s7] sm:$0x1f]  ;;  %p532_p0 = scmp.ne.s32.totalorder %s447_s18, %s531_s5  ;;  %p537_p2 = scmp.lt.s32.totalorder %s531_s5, %s531_s5 }
   0xd   :  { %491 = vmatmul.mubr.msk.f32.gmra.mxu0 %vm56_vm0, %v36_v10  ;;  %163 = vperm.xlu1 %530, %v158_v11   ;;  %p538_p3 = por %p537_p2, %p536_p1 }
   0xe   :  { %493 = vmatprep.mubr.msk.f32.mxu0 %vm554_vm1, %v553_v1 }
   0xf   :  { %277 = vperm.xlu0 %529, %v274_v12   ;;  %p539_p4 = pnand %p538_p3, %p532_p0 }
  0x11   :  { %494 = vmatmul.mubr.msk.f32.gmra.mxu0 %vm56_vm0, %v37_v13  ;;  %361 = vperm.xlu1 %530, %v358_v14  }
  0x12   :  { %522 = vmatprep.mubr.msk.f32.mxu0 %vm554_vm1, %v553_v1 }
  0x7e   :  { %v54_v16 = vpop.permute.xlu0 %53 }
  0x80   :  { %v44_v20 = vpop.permute.xlu1 %43 }
  0x82   :  { %v49_v21 = vpop.permute.xlu0 %48 }
  0x84   :  { %v174_v35 = vpop.permute.xlu1 %173 }
  0x86   :  { %v169_v38 = vpop.permute.xlu0 %168 }
  0x88   :  { %v164_v42 = vpop.permute.xlu1 %163 }
  0x8a   :  { %v278_v49 = vpop.permute.xlu0 %277 }
  0x8c   :  { %v362_v55 = vpop.permute.xlu1 %361 }
  0xc9   :  { %v138_v15 = vpop.f32.mrf.mxu0 }
  0xca   :  { %v139_v26 = vadd.f32 %v138_v15, %v44_v20 }
  0xcb   :  { %v489_v17 = vpop.f32.mrf.mxu0 }
  0xcc   :  { %v152_v29 = vmax.f32 %v139_v26, 0.0 }
  0xcd   :  { %v143_v18 = vpop.f32.mrf.mxu0 }
  0xce   :  { %v144_v23 = vadd.f32 %v143_v18, %v49_v21 }
  0xcf   :  { %v492_v19 = vpop.f32.mrf.mxu0 }
  0xd0   :  { %v153_v28 = vmax.f32 %v144_v23, 0.0 }
  0xd1   :  { %v148_v22 = vpop.f32.mrf.mxu0 }
  0xd2   :  { %v149_v24 = vadd.f32 %v148_v22, %v54_v16 }
  0xd3   :  { %v495_v25 = vpop.f32.mrf.mxu0 }
  0xd4   :  { %v154_v27 = vmax.f32 %v149_v24, 0.0 }
  0xd6   :  { %497 = vmatpush3.msk.msra.mxu1 %vm186_vm2, %v154_v27 }
  0xd7   :  { %498 = vmatprep.subr.mxu1 %v553_v1 }
  0xd8   :  { %499 = vmatpush3.msra.mxu1 %v153_v28 }
  0xd9   :  { %500 = vmatprep.subr.mxu1 %v553_v1 }
  0xda   :  { %501 = vmatpush3.msra.mxu1 %v152_v29 }
  0xdb   :  { %503 = vmatmul.mubr.msk.f32.vlgmr.msra.gmra.mxu1 %vm176_vm3, %v155_v30  ;;  %511 = vmatprep.subr.mxu1 %v553_v1 }
  0xdc   :  { %505 = vmatprep.mubr.msk.f32.mxu1 %vm554_vm1, %v553_v1 }
  0xdf   :  { %506 = vmatmul.mubr.msk.f32.gmra.mxu1 %vm176_vm3, %v156_v31 }
  0xe0   :  { %508 = vmatprep.mubr.msk.f32.mxu1 %vm554_vm1, %v553_v1 }
  0xe3   :  { %509 = vmatmul.mubr.msk.f32.gmra.mxu1 %vm176_vm3, %v157_v32 }
  0xe4   :  { %517 = vmatprep.mubr.msk.f32.mxu1 %vm554_vm1, %v553_v1 }
 0x19b   :  { %v256_v33 = vpop.f32.mrf.mxu1 }
 0x19c   :  { %v257_v44 = vadd.f32 %v256_v33, %v164_v42 }
 0x19d   :  { %v504_v34 = vpop.f32.mrf.mxu1 }
 0x19e   :  { %v270_v47 = vmax.f32 %v257_v44, 0.0 }
 0x19f   :  { %v261_v36 = vpop.f32.mrf.mxu1 }
 0x1a0   :  { %v262_v40 = vadd.f32 %v261_v36, %v169_v38 }
 0x1a1   :  { %v507_v37 = vpop.f32.mrf.mxu1 }
 0x1a2   :  { %v271_v46 = vmax.f32 %v262_v40, 0.0 }
 0x1a3   :  { %v266_v39 = vpop.f32.mrf.mxu1 }
 0x1a4   :  { %v267_v41 = vadd.f32 %v266_v39, %v174_v35 }
 0x1a5   :  { %v510_v43 = vpop.f32.mrf.mxu1 }
 0x1a6   :  { %v272_v45 = vmax.f32 %v267_v41, 0.0 }
 0x1a8   :  { %512 = vmatpush3.msk.msra.mxu1 %vm186_vm2, %v272_v45 }
 0x1a9   :  { %513 = vmatprep.subr.mxu1 %v553_v1 }
 0x1aa   :  { %514 = vmatpush3.msra.mxu1 %v271_v46 }
 0x1ab   :  { %515 = vmatprep.subr.mxu1 %v553_v1 }
 0x1ac   :  { %516 = vmatpush3.msra.mxu1 %v270_v47 }
 0x1ad   :  { %518 = vmatmul.mubr.msk.f32.vlgmr.msra.gmra.mxu1 %vm176_vm3, %v273_v48 }
 0x26d   :  { %v352_v50 = vpop.f32.mrf.mxu1 }
 0x26e   :  { %v353_v51 = vadd.f32 %v352_v50, %v278_v49 }
 0x26f   :  { %v519_v52 = vpop.f32.mrf.mxu1 }
 0x270   :  { %v356_v53 = vmax.f32 %v353_v51, 0.0 }
 0x272   :  { %521 = vmatpush3.msra.mxu0 %v356_v53 }
 0x273   :  { %523 = vmatmul.mubr.msk.f32.vlgmr.msra.gmra.mxu0 %vm364_vm4, %v357_v54 }
 0x333   :  { %v434_v56 = vpop.f32.mrf.mxu0 }
 0x334   :  { %v435_v57 = vadd.f32 %v434_v56, %v362_v55 }
 0x335   :  { %v524_v58 = vpop.f32.mrf.mxu0 }
 0x336   :  { %439 = vst.msk [vmem:[#allocation2] sm:$0x1f] %vm438_vm5, %v435_v57 }
 0x337   :  { %542 = shalt.err (!%p539_p4)
}
 0x338   :  { %449 = dma.vmem_to_hbm [thread:$0]  %s447_s18, 128, %s709_s9, [#allocation3]  }
 0x339   :  { %551 = dma.done.wait [#allocation3], 128  }
 0x33a   :  { %552 = vsyncadd [#allocation3], 4294967168 }
 0x33b   :  { %453 = vsyncpa [#allocation3], 1 }

</bundles_post_ra>
